<compile_context>
chip_gen: v7x
topology: tpu7x:2x2x1
jax: 0.10.0
libtpu: 0.0.40
codegen_flags: <defaults>
</compile_context>

<pallas_src>
import functools

import jax
import jax.numpy as jnp
from jax.experimental import pallas as pl
from jax.experimental.pallas import tpu as pltpu

IS_COVERAGE = True  # Config.is_coverage


# ----------------------------------------------------------------------------
# Kernel
# ----------------------------------------------------------------------------
def _local_attention_kernel(target_ref, enc_ref, mask_ref, cov_ref,
                            wdec_t_ref, vecs_ref,
                            out_ref, attn_ref, cov_out_ref=None,
                            *, compute_dtype=jnp.float32):
    cdt = compute_dtype

    # Packed resident vectors: row 0 = b_dec, row 1 = W_c, row 2 = v.
    b_dec = vecs_ref[0:1, :]                                   # (1, E) f32
    w_c = vecs_ref[1:2, :]                                     # (1, E) f32
    v_vec = vecs_ref[2:3, :]                                   # (1, E) f32

    # dec_fea = decode_proj(target_t) = target @ W_dec^T + b_dec   (MXU, f32 acc)
    target = target_ref[...].astype(jnp.float32)               # (tb, E)
    dec_fea = jnp.dot(target, wdec_t_ref[...],
                      preferred_element_type=jnp.float32) + b_dec   # (tb, E)

    mask = mask_ref[...].astype(jnp.float32)                   # (tb, T)
    cov = cov_ref[...].astype(jnp.float32)                     # (tb, T)

    # Elementwise chain over the dominant (tb, T, E) stream in compute dtype
    # (bf16 on v6e/v7x halves vreg/VMEM pressure and doubles VALU/EUP rate).
    enc_c = enc_ref[...].astype(cdt)                           # (tb, T, E)
    att = enc_c + dec_fea.astype(cdt)[:, None, :]
    if IS_COVERAGE:
        # W_c is Linear(1, E, bias=False): coverage_feature = cov * w_c
        att = att + cov.astype(cdt)[:, :, None] * w_c.astype(cdt)[None, :, :]
    e = jnp.tanh(att)                                          # EUP

    # scores = v(e): multiply in compute dtype, accumulate the lane reduce in f32.
    scores = jnp.sum((e * v_vec.astype(cdt)[None, :, :]).astype(jnp.float32),
                     axis=-1)                                  # (tb, T)

    # softmax-then-mask-then-renormalize.  The intermediate /Z of the softmax
    # cancels algebraically in the renormalization, so divide once by the
    # masked sum; all-masked rows guarded to zero (matches the torch code).
    m = jnp.max(scores, axis=-1, keepdims=True)
    ex = jnp.exp(scores - m)
    attn_un = ex * mask
    norm = jnp.sum(attn_un, axis=-1, keepdims=True)
    norm = jnp.where(norm == 0.0, 1.0, norm)
    attn = attn_un / norm                                      # (tb, T) f32

    # context = sum_T attn * enc  (VPU mul + sublane reduce, f32 accumulation).
    # NOTE: if a bundle dump shows the XLU slot saturating, this reduce can be
    # moved to the (otherwise idle) MXU via a batched lax.dot_general.
    ctx = jnp.sum((attn.astype(cdt)[:, :, None] * enc_c).astype(jnp.float32),
                  axis=1)                                      # (tb, E)

    out_ref[...] = ctx.astype(out_ref.dtype)
    attn_ref[...] = attn.astype(attn_ref.dtype)
    if IS_COVERAGE:
        cov_out_ref[...] = (cov + attn).astype(cov_out_ref.dtype)


# ----------------------------------------------------------------------------
# One-time weight packing (hoisted out of the per-decode-step call path)
# ----------------------------------------------------------------------------
def pack_attention_params(params):
    """Pack W_dec^T and the three E-vectors (b_dec, W_c, v) into kernel layout.

    The three vectors go into a single resident (8, E) f32 tile (one aligned
    BlockSpec / one DMA instead of three 1-sublane padded tiles)."""
    E = params["W_dec"].shape[0]
    vecs = jnp.zeros((8, E), jnp.float32)
    vecs = vecs.at[0].set(jnp.asarray(params["b_dec"], jnp.float32).reshape(E))
    if IS_COVERAGE:
        vecs = vecs.at[1].set(jnp.asarray(params["W_c"], jnp.float32).reshape(E))
    vecs = vecs.at[2].set(jnp.asarray(params["v"], jnp.float32).reshape(E))
    return {
        "W_dec_T": jnp.asarray(params["W_dec"], jnp.float32).T,  # kernel does x @ W^T
        "vecs": vecs,                                            # rows: b_dec, W_c, v
    }


# ----------------------------------------------------------------------------
# Generation-aware sizing helpers
# ----------------------------------------------------------------------------
def _round_up(x, m):
    return ((x + m - 1) // m) * m


def _vmem_capacity_bytes():
    try:
        cap = int(pltpu.get_tpu_info().vmem_capacity_bytes)
        if cap > 0:
            return cap
    except Exception:
        pass
    return 64 * 1024 * 1024  # conservative fallback (v7x per-TensorCore VMEM)


def _elementwise_compute_dtype(enc_dtype):
    """bf16 elementwise chain only where the VPU/EUP have native bf16 (v6e+);
    v5e and earlier (no bf16 VALU/EUP) stay in f32."""
    if jnp.dtype(enc_dtype) != jnp.dtype(jnp.bfloat16):
        return jnp.float32
    try:
        ver = getattr(pltpu.get_tpu_info(), "chip_version", None)
        name = str(getattr(ver, "name", ver)).lower()
        if any(v in name for v in ("v2", "v3", "v4", "v5")):
            return jnp.float32
    except Exception:
        pass
    return jnp.bfloat16


def _pad_seq_len(T):
    """Lane-dense T (multiple of 128) for the attn/coverage stores and the
    (tb, T) softmax path, but only when the implied extra O(B*T*E) enc
    streaming is small (<= ~12.5%) - enc reads dominate HBM bytes in this
    kernel, so blindly padding tiny T would inflate the dominant stream.
    Otherwise keep sublane alignment (multiple of 8)."""
    t128 = _round_up(T, 128)
    if t128 - T <= max(T // 8, 0):
        return t128
    return _round_up(T, 8)


def _per_row_vmem_bytes(T, E, enc_itemsize, comp_itemsize, enc_buffers):
    return (enc_buffers * T * E * enc_itemsize   # pipelined enc tiles
            + 2 * (E + 2 * T) * 4                # target/mask/cov tiles (x2 buffers)
            + 2 * (E + 2 * T) * 4                # out/attn/cov_out tiles (x2 buffers)
            + 3 * T * E * comp_itemsize          # att / tanh / weighted-enc temporaries
            + T * E * 4)                         # one f32 upcast for the reductions


def _pick_batch_tile(B, T, E, enc_itemsize, comp_itemsize, budget_bytes,
                     enc_buffers=2):
    """Largest batch tile whose pipelined tiles + intermediates fit the budget.

    Returns (tile, padded_batch) with padded_batch a multiple of tile, so a
    budget-respecting tile always exists (no whole-batch fallback that could
    blow past v7x's 64 MiB VMEM)."""
    per_row = _per_row_vmem_bytes(T, E, enc_itemsize, comp_itemsize, enc_buffers)
    max_tb = max(1, budget_bytes // max(per_row, 1))
    if B <= max_tb:
        return B, B
    tb = (max_tb // 8) * 8
    if tb >= 256:
        tb = (tb // 256) * 256   # fill the 256-wide MXU rows on v6e/v7x
    tb = max(tb, 8)              # minimum sublane-aligned tile
    return tb, _round_up(B, tb)


# ----------------------------------------------------------------------------
# Wrapper
# ----------------------------------------------------------------------------
def local_attention(target_t, encode_features, source_mask, coverage, packed,
                    *, enc_buffers=2):
    B, T, E = encode_features.shape
    enc_itemsize = jnp.dtype(encode_features.dtype).itemsize
    cdt = _elementwise_compute_dtype(encode_features.dtype)
    comp_itemsize = jnp.dtype(cdt).itemsize

    cap = _vmem_capacity_bytes()
    budget = cap // 4            # ~32 MiB of tiles on v5e/v6e, ~16 MiB on v7x
    T_pad = _pad_seq_len(T)
    tb, B_pad = _pick_batch_tile(B, T_pad, E, enc_itemsize, comp_itemsize,
                                 budget, enc_buffers)

    # Zero-pad to (B_pad, T_pad).  mask=0 on pads keeps padded positions at
    # exactly zero probability after mask+renormalize; padded batch rows are
    # sliced off below.
    pb, pt = B_pad - B, T_pad - T
    if pb or pt:
        target_t = jnp.pad(target_t, ((0, pb), (0, 0)))
        encode_features = jnp.pad(encode_features, ((0, pb), (0, pt), (0, 0)))
        source_mask = jnp.pad(source_mask, ((0, pb), (0, pt)))
        coverage = jnp.pad(coverage, ((0, pb), (0, pt)))

    grid = (B_pad // tb,)

    enc_spec_kwargs = {}
    if enc_buffers != 2:
        # Extra pipeline depth for the enc stream only (enable if xprof shows
        # exposed DMA); costs one more enc tile of VMEM.
        enc_spec_kwargs["pipeline_mode"] = pl.Buffered(enc_buffers)

    in_specs = [
        pl.BlockSpec((tb, E), lambda b: (b, 0)),                 # target_t
        pl.BlockSpec((tb, T_pad, E), lambda b: (b, 0, 0),
                     **enc_spec_kwargs),                         # encode_features
        pl.BlockSpec((tb, T_pad), lambda b: (b, 0)),             # source_mask
        pl.BlockSpec((tb, T_pad), lambda b: (b, 0)),             # coverage
        pl.BlockSpec((E, E), lambda b: (0, 0)),                  # W_dec^T (resident)
        pl.BlockSpec((8, E), lambda b: (0, 0)),                  # packed b_dec/W_c/v
    ]
    out_specs = [
        pl.BlockSpec((tb, E), lambda b: (b, 0)),                 # context vector
        pl.BlockSpec((tb, T_pad), lambda b: (b, 0)),             # attn_dist
    ]
    out_shape = [
        jax.ShapeDtypeStruct((B_pad, E), target_t.dtype),
        jax.ShapeDtypeStruct((B_pad, T_pad), jnp.float32),
    ]
    io_aliases = {}
    if IS_COVERAGE:
        out_specs.append(pl.BlockSpec((tb, T_pad), lambda b: (b, 0)))
        out_shape.append(jax.ShapeDtypeStruct((B_pad, T_pad), coverage.dtype))
        io_aliases = {3: 2}  # reuse the coverage HBM buffer for updated coverage

    per_row = _per_row_vmem_bytes(T_pad, E, enc_itemsize, comp_itemsize,
                                  enc_buffers)
    weights_bytes = (E * E + 8 * E) * 4
    est_vmem = tb * per_row + weights_bytes
    # Headroom for Mosaic internal scratch, capped at 3/4 of physical VMEM
    # (96 MiB on v5e/v6e, 48 MiB on v7x).
    vmem_limit = int(min(cap * 3 // 4, max(16 * 1024 * 1024, 2 * est_vmem)))

    cost = pl.CostEstimate(
        flops=int(2 * B_pad * E * E + 10 * B_pad * T_pad * E + 10 * B_pad * T_pad),
        transcendentals=int(B_pad * T_pad * E + B_pad * T_pad),
        bytes_accessed=int(enc_itemsize * B_pad * T_pad * E
                           + 4 * B_pad * (E + 2 * T_pad)     # target, mask, coverage in
                           + 4 * (E * E + 8 * E)             # weights
                           + 4 * B_pad * (E + 2 * T_pad)),   # outputs
    )

    kernel = functools.partial(_local_attention_kernel, compute_dtype=cdt)

    outs = pl.pallas_call(
        kernel,
        out_shape=tuple(out_shape),
        grid_spec=pltpu.PrefetchScalarGridSpec(
            num_scalar_prefetch=0,
            grid=grid,
            in_specs=in_specs,
            out_specs=tuple(out_specs),
        ),
        input_output_aliases=io_aliases,
        compiler_params=pltpu.CompilerParams(
            dimension_semantics=("parallel",),   # batch tiles shard across v7x's 2 TCs
            vmem_limit_bytes=vmem_limit,
        ),
        cost_estimate=cost,
    )(target_t, encode_features, source_mask, coverage,
      packed["W_dec_T"], packed["vecs"])

    if IS_COVERAGE:
        out, attn, cov_new = outs
    else:
        out, attn = outs
        cov_new = coverage
    # Strip batch / sequence padding.
    return out[:B], attn[:B, :T], cov_new[:B, :T]


# ----------------------------------------------------------------------------
# Pure-JAX reference (mirrors the PyTorch LocalAttention.forward)
# ----------------------------------------------------------------------------
def _reference(target_t, enc, mask, cov, params):
    B, T, E = enc.shape
    dec_fea = target_t @ params["W_dec"].T + params["b_dec"]
    att = enc + dec_fea[:, None, :]
    if IS_COVERAGE:
        att = att + cov[:, :, None] * params["W_c"].reshape(1, 1, E)
    e = jnp.tanh(att)
    scores = jnp.einsum("bte,e->bt", e, params["v"].reshape(E))
    sm = jax.nn.softmax(scores, axis=1)
    attn_ = sm * mask
    norm = jnp.sum(attn_, axis=1, keepdims=True)
    norm = jnp.where(norm == 0.0, 1.0, norm)
    attn = attn_ / norm
    output = jnp.einsum("bt,bte->be", attn, enc)
    cov_out = cov + attn if IS_COVERAGE else cov
    return output, attn, cov_out


if __name__ == "__main__":
    B, T, E = 2, 8, 32  # batch, source length t_k, source_dim
    key = jax.random.PRNGKey(0)
    ks = jax.random.split(key, 8)

    # Deterministic parameter init (shapes from LocalAttention.__init__).
    params = {
        "W_dec": jax.random.normal(ks[0], (E, E), jnp.float32) * 0.1,  # decode_proj.weight
        "b_dec": jax.random.normal(ks[1], (E,), jnp.float32) * 0.1,    # decode_proj.bias
        "v":     jax.random.normal(ks[2], (1, E), jnp.float32) * 0.1,  # v.weight
        "W_c":   jax.random.normal(ks[3], (E, 1), jnp.float32) * 0.1,  # W_c.weight
    }
    packed = pack_attention_params(params)  # hoisted one-time packing

    target_t = jax.random.normal(ks[4], (B, E), jnp.float32)
    encode_features = jax.random.normal(ks[5], (B, T, E), jnp.float32)
    # mask with some zeroed positions (second row masks half the sequence)
    source_mask = jnp.concatenate(
        [jnp.ones((1, T), jnp.float32),
         jnp.concatenate([jnp.ones((1, T // 2), jnp.float32),
                          jnp.zeros((1, T - T // 2), jnp.float32)], axis=1)],
        axis=0)
    coverage = jax.random.uniform(ks[6], (B, T), jnp.float32)
    # The kernel aliases (donates) its coverage input buffer, so keep an
    # independent copy per kernel run.
    coverage_f32 = coverage + 0.0
    coverage_bf16 = coverage + 0.0

    # --- f32 storage path ---
    ref_out, ref_attn, ref_cov = _reference(
        target_t, encode_features, source_mask, coverage, params)
    out, attn, cov_new = local_attention(
        target_t, encode_features, source_mask, coverage_f32, packed)
    jax.block_until_ready((out, attn, cov_new))
    assert jnp.allclose(out, ref_out, atol=1e-5, rtol=1e-5)
    assert jnp.allclose(attn, ref_attn, atol=1e-5, rtol=1e-5)
    assert jnp.allclose(cov_new, ref_cov, atol=1e-5, rtol=1e-5)

    # --- bf16 enc storage path (halves HBM/VMEM traffic of the only O(B*T*E)
    #     tensor; bf16 elementwise chain on v6e/v7x, f32 chain on v5e) ---
    enc_bf16 = encode_features.astype(jnp.bfloat16)
    ref_out_b, ref_attn_b, ref_cov_b = _reference(
        target_t, enc_bf16.astype(jnp.float32), source_mask, coverage, params)
    out_b, attn_b, cov_b = local_attention(
        target_t, enc_bf16, source_mask, coverage_bf16, packed)
    jax.block_until_ready((out_b, attn_b, cov_b))
    assert jnp.allclose(out_b, ref_out_b, atol=5e-2, rtol=5e-2)
    assert jnp.allclose(attn_b, ref_attn_b, atol=5e-2, rtol=5e-2)
    assert jnp.allclose(cov_b, ref_cov_b, atol=5e-2, rtol=5e-2)

    print("KERNEL_OK")
</pallas_src>

<mosaic_0001>
module attributes {stable_mosaic.version = 11 : i64} {
  func.func @_local_attention_kernel(%arg0: i32, %arg1: memref<2x32xf32, #tpu.memory_space<vmem>>, %arg2: memref<2x8x32xf32, #tpu.memory_space<vmem>>, %arg3: memref<2x8xf32, #tpu.memory_space<vmem>>, %arg4: memref<2x8xf32, #tpu.memory_space<vmem>>, %arg5: memref<32x32xf32, #tpu.memory_space<vmem>>, %arg6: memref<8x32xf32, #tpu.memory_space<vmem>>, %arg7: memref<2x32xf32, #tpu.memory_space<vmem>>, %arg8: memref<2x8xf32, #tpu.memory_space<vmem>>, %arg9: memref<2x8xf32, #tpu.memory_space<vmem>>) attributes {dimension_semantics = [#tpu.dimension_semantics<parallel>], iteration_bounds = array<i64: 1>, scalar_prefetch = 0 : i64, scratch_operands = 0 : i64, tpu.core_type = #tpu.core_type<tc>, window_params = [{transform_indices = @transform_0, window_bounds = array<i64: 2, 32>}, {transform_indices = @transform_1, window_bounds = array<i64: 2, 8, 32>}, {transform_indices = @transform_2, window_bounds = array<i64: 2, 8>}, {transform_indices = @transform_3, window_bounds = array<i64: 2, 8>}, {pipeline_mode = #tpu.pipeline_mode<synchronous>, transform_indices = @transform_4, window_bounds = array<i64: 32, 32>}, {pipeline_mode = #tpu.pipeline_mode<synchronous>, transform_indices = @transform_5, window_bounds = array<i64: 8, 32>}, {transform_indices = @transform_6, window_bounds = array<i64: 2, 32>}, {transform_indices = @transform_7, window_bounds = array<i64: 2, 8>}, {transform_indices = @transform_8, window_bounds = array<i64: 2, 8>}]} {
    %c0 = arith.constant 0 : index
    %c0_0 = arith.constant 0 : index
    %0 = vector.load %arg6[%c0, %c0_0] : memref<8x32xf32, #tpu.memory_space<vmem>>, vector<1x32xf32>
    %c1 = arith.constant 1 : index
    %c0_1 = arith.constant 0 : index
    %1 = vector.load %arg6[%c1, %c0_1] : memref<8x32xf32, #tpu.memory_space<vmem>>, vector<1x32xf32>
    %c2 = arith.constant 2 : index
    %c0_2 = arith.constant 0 : index
    %2 = vector.load %arg6[%c2, %c0_2] : memref<8x32xf32, #tpu.memory_space<vmem>>, vector<1x32xf32>
    %c0_3 = arith.constant 0 : index
    %c0_4 = arith.constant 0 : index
    %3 = vector.load %arg1[%c0_3, %c0_4] : memref<2x32xf32, #tpu.memory_space<vmem>>, vector<2x32xf32>
    %c0_5 = arith.constant 0 : index
    %c0_6 = arith.constant 0 : index
    %4 = vector.load %arg5[%c0_5, %c0_6] : memref<32x32xf32, #tpu.memory_space<vmem>>, vector<32x32xf32>
    %cst = arith.constant dense<0.000000e+00> : vector<2x32xf32>
    %5 = tpu.matmul %3, %4, %cst {dimension_numbers = #tpu.dot_dimension_numbers<[1], [0], [0], [1], [0, 0, 1, 1], [], []>} : vector<2x32xf32>, vector<32x32xf32>, vector<2x32xf32> -> vector<2x32xf32>
    %6 = vector.broadcast %0 : vector<1x32xf32> to vector<2x32xf32>
    %7 = arith.addf %5, %6 : vector<2x32xf32>
    %c0_7 = arith.constant 0 : index
    %c0_8 = arith.constant 0 : index
    %8 = vector.load %arg3[%c0_7, %c0_8] : memref<2x8xf32, #tpu.memory_space<vmem>>, vector<2x8xf32>
    %c0_9 = arith.constant 0 : index
    %c0_10 = arith.constant 0 : index
    %9 = vector.load %arg4[%c0_9, %c0_10] : memref<2x8xf32, #tpu.memory_space<vmem>>, vector<2x8xf32>
    %c0_11 = arith.constant 0 : index
    %c0_12 = arith.constant 0 : index
    %c0_13 = arith.constant 0 : index
    %10 = vector.load %arg2[%c0_11, %c0_12, %c0_13] : memref<2x8x32xf32, #tpu.memory_space<vmem>>, vector<2x8x32xf32>
    %11 = vector.shape_cast %7 : vector<2x32xf32> to vector<2x1x32xf32>
    %12 = vector.broadcast %11 : vector<2x1x32xf32> to vector<2x8x32xf32>
    %13 = arith.addf %10, %12 : vector<2x8x32xf32>
    %14 = vector.shape_cast %9 : vector<2x8xf32> to vector<2x8x1xf32>
    %15 = vector.shape_cast %1 : vector<1x32xf32> to vector<1x1x32xf32>
    %16 = vector.broadcast %14 : vector<2x8x1xf32> to vector<2x8x32xf32>
    %17 = vector.broadcast %15 : vector<1x1x32xf32> to vector<2x8x32xf32>
    %18 = arith.mulf %16, %17 : vector<2x8x32xf32>
    %19 = arith.addf %13, %18 : vector<2x8x32xf32>
    %20 = math.tanh %19 : vector<2x8x32xf32>
    %21 = vector.shape_cast %2 : vector<1x32xf32> to vector<1x1x32xf32>
    %22 = vector.broadcast %21 : vector<1x1x32xf32> to vector<2x8x32xf32>
    %23 = arith.mulf %20, %22 : vector<2x8x32xf32>
    %cst_14 = arith.constant dense<0.000000e+00> : vector<2x8xf32>
    %24 = vector.multi_reduction <add>, %23, %cst_14 [2] : vector<2x8x32xf32> to vector<2x8xf32>
    %cst_15 = arith.constant dense<0xFF800000> : vector<2xf32>
    %25 = vector.multi_reduction <maximumf>, %24, %cst_15 [1] : vector<2x8xf32> to vector<2xf32>
    %26 = vector.shape_cast %25 : vector<2xf32> to vector<2x1xf32>
    %27 = vector.broadcast %26 : vector<2x1xf32> to vector<2x8xf32>
    %28 = arith.subf %24, %27 : vector<2x8xf32>
    %29 = math.exp %28 : vector<2x8xf32>
    %30 = arith.mulf %29, %8 : vector<2x8xf32>
    %cst_16 = arith.constant dense<0.000000e+00> : vector<2xf32>
    %31 = vector.multi_reduction <add>, %30, %cst_16 [1] : vector<2x8xf32> to vector<2xf32>
    %32 = vector.shape_cast %31 : vector<2xf32> to vector<2x1xf32>
    %cst_17 = arith.constant 0.000000e+00 : f32
    %33 = vector.broadcast %cst_17 : f32 to vector<2x1xf32>
    %34 = arith.cmpf oeq, %32, %33 : vector<2x1xf32>
    %cst_18 = arith.constant 1.000000e+00 : f32
    %35 = vector.broadcast %cst_18 : f32 to vector<2x1xf32>
    %36 = arith.select %34, %35, %32 : vector<2x1xi1>, vector<2x1xf32>
    %37 = vector.broadcast %36 : vector<2x1xf32> to vector<2x8xf32>
    %38 = arith.divf %30, %37 : vector<2x8xf32>
    %39 = vector.shape_cast %38 : vector<2x8xf32> to vector<2x8x1xf32>
    %40 = vector.broadcast %39 : vector<2x8x1xf32> to vector<2x8x32xf32>
    %41 = arith.mulf %40, %10 : vector<2x8x32xf32>
    %cst_19 = arith.constant dense<0.000000e+00> : vector<2x32xf32>
    %42 = vector.multi_reduction <add>, %41, %cst_19 [1] : vector<2x8x32xf32> to vector<2x32xf32>
    %c0_20 = arith.constant 0 : index
    %c0_21 = arith.constant 0 : index
    %43 = vector.load %arg7[%c0_20, %c0_21] : memref<2x32xf32, #tpu.memory_space<vmem>>, vector<2x32xf32>
    tpu.vector_store %arg7[%c0_20, %c0_21], %42 {strides = array<i32>} : memref<2x32xf32, #tpu.memory_space<vmem>>, vector<2x32xf32>,
    %c0_22 = arith.constant 0 : index
    %c0_23 = arith.constant 0 : index
    %44 = vector.load %arg8[%c0_22, %c0_23] : memref<2x8xf32, #tpu.memory_space<vmem>>, vector<2x8xf32>
    tpu.vector_store %arg8[%c0_22, %c0_23], %38 {strides = array<i32>} : memref<2x8xf32, #tpu.memory_space<vmem>>, vector<2x8xf32>,
    %45 = arith.addf %9, %38 : vector<2x8xf32>
    %c0_24 = arith.constant 0 : index
    %c0_25 = arith.constant 0 : index
    %46 = vector.load %arg9[%c0_24, %c0_25] : memref<2x8xf32, #tpu.memory_space<vmem>>, vector<2x8xf32>
    tpu.vector_store %arg9[%c0_24, %c0_25], %45 {strides = array<i32>} : memref<2x8xf32, #tpu.memory_space<vmem>>, vector<2x8xf32>,
    return
  }
  func.func @transform_0(%arg0: i32) -> (i32, i32) {
    %c0_i32 = arith.constant 0 : i32
    %c0_i32_0 = arith.constant 0 : i32
    return %arg0, %c0_i32 : i32, i32
  }
  func.func @transform_1(%arg0: i32) -> (i32, i32, i32) {
    %c0_i32 = arith.constant 0 : i32
    %c0_i32_0 = arith.constant 0 : i32
    %c0_i32_1 = arith.constant 0 : i32
    return %arg0, %c0_i32, %c0_i32_0 : i32, i32, i32
  }
  func.func @transform_2(%arg0: i32) -> (i32, i32) {
    %c0_i32 = arith.constant 0 : i32
    %c0_i32_0 = arith.constant 0 : i32
    return %arg0, %c0_i32 : i32, i32
  }
  func.func @transform_3(%arg0: i32) -> (i32, i32) {
    %c0_i32 = arith.constant 0 : i32
    %c0_i32_0 = arith.constant 0 : i32
    return %arg0, %c0_i32 : i32, i32
  }
  func.func @transform_4(%arg0: i32) -> (i32, i32) {
    %c0_i32 = arith.constant 0 : i32
    %c0_i32_0 = arith.constant 0 : i32
    %c0_i32_1 = arith.constant 0 : i32
    return %c0_i32, %c0_i32_0 : i32, i32
  }
  func.func @transform_5(%arg0: i32) -> (i32, i32) {
    %c0_i32 = arith.constant 0 : i32
    %c0_i32_0 = arith.constant 0 : i32
    %c0_i32_1 = arith.constant 0 : i32
    return %c0_i32, %c0_i32_0 : i32, i32
  }
  func.func @transform_6(%arg0: i32) -> (i32, i32) {
    %c0_i32 = arith.constant 0 : i32
    %c0_i32_0 = arith.constant 0 : i32
    return %arg0, %c0_i32 : i32, i32
  }
  func.func @transform_7(%arg0: i32) -> (i32, i32) {
    %c0_i32 = arith.constant 0 : i32
    %c0_i32_0 = arith.constant 0 : i32
    return %arg0, %c0_i32 : i32, i32
  }
  func.func @transform_8(%arg0: i32) -> (i32, i32) {
    %c0_i32 = arith.constant 0 : i32
    %c0_i32_0 = arith.constant 0 : i32
    return %arg0, %c0_i32 : i32, i32
  }
}

</mosaic_0001>

<bundles_post_ra>
// kernel: tpu_custom_call.1
= control target key start
LH: loop header
LB: loop body
LE: loop exit
PB: predicated region body
PF: predicated region fallthrough
CT: control target
= control target key end

     0   :  { %14 = vsyncpa [#allocation3], 0  ;;  %s851_s0 = inlined_call_operand.vmem [shape: f32[2,32], index: 0, kind: input, shape index: {}]   ;;  %s852_s1 = inlined_call_operand.vmem [shape: f32[2,8,32], index: 1, kind: input, shape index: {}]   ;;  %s853_s2 = inlined_call_operand.hbm [shape: f32[2,8], index: 2, kind: input, shape index: {}]   ;;  %s854_s3 = inlined_call_operand.hbm [shape: f32[2,8], index: 3, kind: input, shape index: {}, may-alias: {3,8}]   ;;  %s855_s4 = inlined_call_operand.hbm [shape: f32[32,32], index: 4, kind: input, shape index: {}]   ;;  %s856_s5 = inlined_call_operand.hbm [shape: f32[8,32], index: 5, kind: input, shape index: {}]   ;;  %s857_s6 = inlined_call_operand.hbm [shape: f32[2,32], index: 6, kind: output, shape index: {0}]   ;;  %s858_s7 = inlined_call_operand.hbm [shape: f32[2,8], index: 7, kind: output, shape index: {1}]   ;;  %s859_s8 = inlined_call_operand.hbm [shape: f32[2,8], index: 8, kind: output, shape index: {2}, may-alias: {3,8}]  }
   0x1   :  { %15 = vsyncpa [#allocation6], 0 }
   0x2   :  { %16 = vsyncpa [#allocation9], 0 }
   0x3   :  { %17 = vsyncpa [#allocation4], 0 }
   0x4   :  { %18 = vsyncpa [#allocation12], 0  ;;  %s638_s27 = smov [#allocation5]   ;;  %s639_s29 = smov [#allocation2]  }
   0x5   :  { %s39_s28 = sshll.u32 %s638_s27, 4  ;;  %s29_s30 = sshll.u32 %s639_s29, 4  ;;  %s40_s28 = int_to_ptr.vmem [resolvable:$true] %s39_s28  ;;  %s30_s30 = int_to_ptr.vmem [resolvable:$true] %s29_s30 }
   0x6   :  { %s474_s11 = scalar_lea.hbm %s854_s3, 32 }
   0x7   :  { %p475_p0 = scmp.ne.s32.totalorder %s854_s3, %s474_s11  ;;  %p478_p1 = scmp.lt.u32.totalorder %s474_s11, %s854_s3 }
   0x9   :  { %p480_p2 = pnand %p478_p1, %p475_p0 }
   0xb   :  { %483 = shalt.err (!%p480_p2)
}
   0xc   :  { %s484_s16 = scalar_lea.vmem %s40_s28, 32  ;;  %p489_p4 = scmp.lt.s32.totalorder %s40_s28, %s40_s28 }
   0xd   :  { %p485_p3 = scmp.ne.s32.totalorder %s40_s28, %s484_s16  ;;  %p490_p5 = scmp.lt.s32.totalorder %s484_s16, %s484_s16 }
   0xf   :  { %p491_p6 = por %p490_p5, %p489_p4 }
  0x11   :  { %p492_p7 = pnand %p491_p6, %p485_p3 }
  0x13   :  { %495 = shalt.err (!%p492_p7)
}
  0x14   :  { %42 = dma.hbm_to_vmem [thread:$0]  %s854_s3, 32, %s40_s28, [#allocation6]  }
  0x15   :  { %s496_s21 = scalar_lea.hbm %s853_s2, 32 }
  0x16   :  { %p497_p8 = scmp.ne.s32.totalorder %s853_s2, %s496_s21  ;;  %p500_p9 = scmp.lt.u32.totalorder %s496_s21, %s853_s2 }
  0x18   :  { %p502_p10 = pnand %p500_p9, %p497_p8 }
  0x1a   :  { %505 = shalt.err (!%p502_p10)
}
  0x1b   :  { %s506_s26 = scalar_lea.vmem %s30_s30, 32  ;;  %p511_p12 = scmp.lt.s32.totalorder %s30_s30, %s30_s30 }
  0x1c   :  { %p507_p11 = scmp.ne.s32.totalorder %s30_s30, %s506_s26  ;;  %p512_p13 = scmp.lt.s32.totalorder %s506_s26, %s506_s26 }
  0x1e   :  { %p513_p0 = por %p512_p13, %p511_p12 }
  0x20   :  { %p514_p1 = pnand %p513_p0, %p507_p11 }
  0x22   :  { %517 = shalt.err (!%p514_p1)
}
  0x23   :  { %32 = dma.hbm_to_vmem [thread:$0]  %s853_s2, 32, %s30_s30, [#allocation3]  }
  0x24   :  { %s640_s28 = smov [#allocation7]   ;;  %s518_s11 = scalar_lea.hbm %s855_s4, 512 }
  0x25   :  { %s48_s29 = sshll.u32 %s640_s28, 4  ;;  %p519_p2 = scmp.ne.s32.totalorder %s855_s4, %s518_s11  ;;  %s49_s29 = int_to_ptr.vmem [resolvable:$true] %s48_s29 }
  0x26   :  { %p522_p3 = scmp.lt.u32.totalorder %s518_s11, %s855_s4 }
  0x28   :  { %p524_p4 = pnand %p522_p3, %p519_p2 }
  0x2a   :  { %527 = shalt.err (!%p524_p4)
}
  0x2b   :  { %s528_s16 = scalar_lea.vmem %s49_s29, 512  ;;  %p533_p6 = scmp.lt.s32.totalorder %s49_s29, %s49_s29 }
  0x2c   :  { %p529_p5 = scmp.ne.s32.totalorder %s49_s29, %s528_s16  ;;  %p534_p7 = scmp.lt.s32.totalorder %s528_s16, %s528_s16 }
  0x2e   :  { %p535_p8 = por %p534_p7, %p533_p6 }
  0x30   :  { %p536_p9 = pnand %p535_p8, %p529_p5 }
  0x32   :  { %539 = shalt.err (!%p536_p9)
}
  0x33   :  { %s641_s2 = smov 128   ;;  %s642_s30 = smov 8  }
  0x34   :  { %54 = dma.hbm_to_vmem [thread:$0]  %s855_s4, 512, %s49_s29, [#allocation6], %s641_s2, %s641_s2, %s642_s30  }
  0x35   :  { %s643_s19 = smov [#allocation8]   ;;  %s540_s23 = scalar_lea.hbm %s856_s5, 128 }
  0x36   :  { %s61_s20 = sshll.u32 %s643_s19, 4  ;;  %p541_p10 = scmp.ne.s32.totalorder %s856_s5, %s540_s23  ;;  %s62_s20 = int_to_ptr.vmem [resolvable:$true] %s61_s20 }
  0x37   :  { %p544_p11 = scmp.lt.u32.totalorder %s540_s23, %s856_s5 }
  0x39   :  { %p546_p12 = pnand %p544_p11, %p541_p10 }
  0x3b   :  { %549 = shalt.err (!%p546_p12)
}
  0x3c   :  { %s550_s27 = scalar_lea.vmem %s62_s20, 128  ;;  %p555_p0 = scmp.lt.s32.totalorder %s62_s20, %s62_s20 }
  0x3d   :  { %p551_p13 = scmp.ne.s32.totalorder %s62_s20, %s550_s27  ;;  %p556_p1 = scmp.lt.s32.totalorder %s550_s27, %s550_s27 }
  0x3f   :  { %p557_p2 = por %p556_p1, %p555_p0 }
  0x41   :  { %p558_p3 = pnand %p557_p2, %p551_p13 }
  0x43   :  { %561 = shalt.err (!%p558_p3)
}
  0x44   :  { %64 = dma.hbm_to_vmem [thread:$0]  %s856_s5, 128, %s62_s20, [#allocation9]  }
  0x45   :  { %628 = dma.done.wait [#allocation3], 32  }
  0x46   :  { %629 = vsyncadd [#allocation3], 4294967264 }
  0x47   :  { %630 = dma.done.wait [#allocation6], 544  }
  0x48   :  { %631 = vsyncadd [#allocation6], 4294966752 }
  0x49   :  { %632 = dma.done.wait [#allocation9], 128  }
  0x4a   :  { %633 = vsyncadd [#allocation9], 4294967168  ;;  %v644_v0 = vmov 0.0|0.0   ;;  %vm645_vm0 = vmmov 0   ;;  %v646_v1 = vmov 0.0   ;;  %v171_v2 = vlaneseq  ;;  %v81_v5 = vld [vmem:[#allocation7] sm:$0xff] }
  0x4b   :  { %440 = vmatprep.subr.bf16.mxu0 %v644_v0  ;;  %437 = vmatprep.mubr.msk.f32.mxu0 %vm645_vm0, %v646_v1  ;;  %v82_v6 = vld [vmem:[#allocation7 + $0x8] sm:$0xff]  ;;  %v83_v7 = vld [vmem:[#allocation7 + $0x10] sm:$0xff]  ;;  %v84_v10 = vld [vmem:[#allocation7 + $0x18] sm:$0xff]  ;;  %vm89_vm1 = vcmask 261120   ;;  %v647_v16 = vmov 1966171168  }
  0x4c   :  { %v745_v3 = vshrl.u32 %v171_v2, 7  ;;  %v441_v9 = vpack.c.bf16 %v82_v6, %v81_v5  ;;  %v753_v11 = vld [vmem:[#allocation5] sm:$0x3]  ;;  %v444_v13 = vpack.c.bf16 %v84_v10, %v83_v7  ;;  %v80_v15 = vld [vmem:[%s851_s0] sm:$0x3]  ;;  %v169_v17 = vunpack.c.l.s4 %v647_v16  ;;  %v773_v34 = vld [vmem:[%s852_s1 + $0x8] sm:$0xff] }
  0x4d   :  { %v420_v19 = vld [vmem:[#allocation8] ss:$0 sm:$0xff]  ;;  %v422_v26 = vld [vmem:[#allocation8 + $0x1] ss:$0 sm:$0xff]  ;;  %v423_v41 = vld [vmem:[#allocation8 + $0x2] ss:$0 sm:$0xff] }
  0x4e   :  { %v748_v4 = vsub.s32 0, %v745_v3  ;;  %v751_v8 = vsub.s32 1, %v745_v3  ;;  %442 = vmatpush3.bf16.msra.mxu0 %v441_v9  ;;  %v170_v18 = vunpack.c.0.s8 %v169_v17  ;;  %v767_v29 = vld [vmem:[%s852_s1] sm:$0xff]  ;;  %v241_v51 = vand.u32 127, %v171_v2  ;;  %s649_s1 = smov [#allocation11]   ;;  %s650_s13 = smov [#allocation13]  }
  0x4f   :  { %443 = vmatprep.subr.bf16.mxu0 %v644_v0  ;;  %v163_v48 = vld [vmem:[#allocation2] sm:$0x3]  ;;  %vm250_vm2 = vcmask 1041409   ;;  %vm253_vm3 = vcmask 58368   ;;  %v648_v59 = vmov 0   ;;  %s392_s12 = sshll.u32 %s649_s1, 4  ;;  %s393_s12 = int_to_ptr.vmem [resolvable:$true] %s392_s12 }
  0x50   :  { %v205_v12 = vrot.slane %v753_v11, %v748_v4  ;;  %v212_v14 = vrot.slane %v753_v11, %v751_v8  ;;  %v173_v20 = vsub.s32 %v170_v18, %v745_v3  ;;  %v278_v49 = vrot.slane %v163_v48, %v748_v4  ;;  %460 = vset.pattern.permute.xlu1 %v648_v59  ;;  %s402_s14 = sshll.u32 %s650_s13, 4  ;;  %s562_s15 = scalar_lea.vmem %s393_s12, 32  ;;  %s806_s14 = int_to_ptr.vmem [resolvable:$true] %s402_s14 }
  0x51   :  { %v285_v50 = vrot.slane %v163_v48, %v751_v8  ;;  %v783_v53 = vsub.s32 %v241_v51, %v745_v3  ;;  %461 = vset.pattern.permute.xlu0 %v648_v59  ;;  %p563_p4 = scmp.ne.s32.totalorder %s393_s12, %s562_s15  ;;  %p567_p5 = scmp.lt.s32.totalorder %s393_s12, %s393_s12 }
  0x52   :  { %207 = vbcast.lane.b32.xlu0 %v205_v12, 256  ;;  %445 = vmatpush3.bf16.msra.mxu0 %v444_v13  ;;  %p568_p6 = scmp.lt.s32.totalorder %s562_s15, %s562_s15 }
  0x54   :  { %p569_p7 = por %p568_p6, %p567_p5 }
  0x55   :  { %438 = vmatmul.mubr.msk.f32.vlgmr.msra.gmra.mrb[0].mxu0 %vm89_vm1, %v80_v15 }
  0x56   :  { %214 = vbcast.lane.b32.xlu0 %v212_v14, 256  ;;  %p570_p8 = pnand %p569_p7, %p563_p4 }
  0xc4   :  { %v208_v22 = vpop.permute.xlu0 %207 }
  0xc5   :  { %v220_v33 = vmul.f32 %v422_v26, %v208_v22 }
  0xc8   :  { %v215_v30 = vpop.permute.xlu0 %214 }
  0xc9   :  { %v221_v37 = vmul.f32 %v422_v26, %v215_v30 }
 0x128   :  { %v159_v21 = vpop.f32.mrb[0].mxu0 }
 0x129   :  { %v160_v23 = vadd.f32 %v420_v19, %v159_v21  ;;  %v439_v24 = vpop.f32.mrb[1].mxu0 }
 0x12b   :  { %v174_v25 = vrot.slane %v160_v23, %v173_v20 }
 0x12d   :  { %v175_v27 = vcombine.high %v174_v25, %v174_v25  ;;  %v182_v28 = vrot.slane %v174_v25, %v173_v20 }
 0x12f   :  { %v189_v31 = vrot.slane %v175_v27, %v173_v20  ;;  %v193_v32 = vrot.slane %v182_v28, %v748_v4 }
 0x131   :  { %v200_v35 = vadd.f32 %v193_v32, %v767_v29  ;;  %v197_v36 = vrot.slane %v189_v31, %v748_v4 }
 0x133   :  { %v222_v38 = vadd.f32 %v220_v33, %v200_v35  ;;  %v201_v39 = vadd.f32 %v197_v36, %v773_v34 }
 0x135   :  { %462 = vtanh.f32 %v222_v38  ;;  %v223_v40 = vadd.f32 %v221_v37, %v201_v39 }
 0x137   :  { %464 = vtanh.f32 %v223_v40 }
 0x13f   :  { %v463_v42 = vpop.eup %462 }
 0x140   :  { %v230_v43 = vmul.f32 %v463_v42, %v423_v41 }
 0x141   :  { %v465_v44 = vpop.eup %464 }
 0x142   :  { %v232_v45 = vsel %vm89_vm1, %v230_v43, 0.0  ;;  %v231_v46 = vmul.f32 %v465_v44, %v423_v41 }
 0x143   :  { %233 = vadd.xlane.f32.xlu1 %v232_v45 }
 0x144   :  { %v235_v47 = vsel %vm89_vm1, %v231_v46, 0.0 }
 0x147   :  { %236 = vadd.xlane.f32.xlu1 %v235_v47 }
 0x158   :  { %280 = vbcast.lane.b32.xlu1 %v278_v49, 256 }
 0x15c   :  { %287 = vbcast.lane.b32.xlu1 %v285_v50, 256 }
 0x1d0   :  { %v234_v52 = vpop.xlane.xlu1 %233 }
 0x1d1   :  { %v245_v55 = vrot.slane %v234_v52, %v783_v53 }
 0x1d4   :  { %v237_v54 = vpop.xlane.xlu1 %236 }
 0x1d5   :  { %v249_v56 = vrot.slane %v237_v54, %v783_v53 }
 0x1d7   :  { %v251_v57 = vsel %vm250_vm2, %v249_v56, %v245_v55 }
 0x1d8   :  { %v254_v58 = vsel %vm253_vm3, %v251_v57, -inf  ;;  %v281_v3 = vpop.permute.xlu1 %280 }
 0x1d9   :  { %255 = vmax.xlane.f32.xlu0 %v254_v58 }
 0x1dc   :  { %v288_v9 = vpop.permute.xlu1 %287 }
 0x266   :  { %v256_v60 = vpop.xlane.xlu0 %255 }
 0x267   :  { %v261_v61 = vrot.slane %v256_v60, %v748_v4  ;;  %v265_v62 = vrot.slane %v256_v60, %v751_v8 }
 0x269   :  { %v268_v63 = vsub.f32 %v234_v52, %v261_v61  ;;  %v269_v0 = vsub.f32 %v237_v54, %v265_v62 }
 0x26b   :  { %v270_v1 = vmul.f32 1.442695, %v268_v63  ;;  %v272_v2 = vmul.f32 1.442695, %v269_v0 }
 0x26d   :  { %466 = vpow2.f32 %v270_v1 }
 0x26e   :  { %468 = vpow2.f32 %v272_v2 }
 0x277   :  { %v467_v5 = vpop.eup %466 }
 0x278   :  { %v291_v6 = vmul.f32 %v467_v5, %v281_v3  ;;  %v469_v7 = vpop.eup %468 }
 0x279   :  { %v292_v10 = vmul.f32 %v469_v7, %v288_v9 }
 0x27a   :  { %296 = vperm.xlu1 %460, %v291_v6  }
 0x27e   :  { %299 = vperm.xlu1 %460, %v292_v10  }
 0x2f9   :  { %v297_v12 = vpop.permute.xlu1 %296 }
 0x2fa   :  { %v304_v14 = vrot.slane %v297_v12, %v783_v53 }
 0x2fd   :  { %v300_v13 = vpop.permute.xlu1 %299 }
 0x2fe   :  { %v308_v15 = vrot.slane %v300_v13, %v783_v53 }
 0x300   :  { %v309_v16 = vsel %vm250_vm2, %v308_v15, %v304_v14 }
 0x301   :  { %v311_v17 = vsel %vm253_vm3, %v309_v16, 0.0 }
 0x302   :  { %312 = vadd.xlane.f32.xlu1 %v311_v17 }
 0x38f   :  { %v313_v18 = vpop.xlane.xlu1 %312 }
 0x390   :  { %vm314_vm4 = vcmp.eq.f32.partialorder %v313_v18, 0.0 }
 0x391   :  { %v315_v19 = vsel %vm314_vm4, 1.0, %v313_v18 }
 0x392   :  { %v320_v20 = vrot.slane %v315_v19, %v748_v4  ;;  %v324_v21 = vrot.slane %v315_v19, %v751_v8 }
 0x394   :  { %470 = vrcp.f32 %v320_v20 }
 0x395   :  { %472 = vrcp.f32 %v324_v21 }
 0x39e   :  { %v471_v22 = vpop.eup %470 }
 0x39f   :  { %v473_v23 = vpop.eup %472  ;;  %v328_v24 = vmul.f32 %v471_v22, %v291_v6 }
 0x3a0   :  { %v330_v25 = vmul.f32 %v473_v23, %v292_v10 }
 0x3a1   :  { %333 = vperm.xlu0 %461, %v328_v24  }
 0x3a2   :  { %338 = vperm.xlu1 %460, %v330_v25  }
 0x420   :  { %v334_v26 = vpop.permute.xlu0 %333 }
 0x421   :  { %v339_v27 = vpop.permute.xlu1 %338  ;;  %v341_v28 = vmul.f32 %v334_v26, %v767_v29  ;;  %v366_v30 = vrot.slane %v334_v26, %v783_v53 }
 0x422   :  { %v342_v4 = vmul.f32 %v339_v27, %v773_v34  ;;  %v370_v8 = vrot.slane %v339_v27, %v783_v53 }
 0x423   :  { %v343_v31 = vsel %vm89_vm1, %v341_v28, 0.0 }
 0x424   :  { %v350_v32 = vsel %vm89_vm1, %v342_v4, 0.0  ;;  %v344_v33 = vrot.slane %v343_v31, 4  ;;  %v371_v35 = vsel %vm250_vm2, %v370_v8, %v366_v30 }
 0x425   :  { %v351_v36 = vrot.slane %v350_v32, 4  ;;  %373 = vst.msk [vmem:[#allocation11] sm:$0x3] %vm253_vm3, %v371_v35  ;;  %v374_v29 = vadd.f32 %v371_v35, %v753_v11 }
 0x426   :  { %v345_v34 = vadd.f32 %v344_v33, %v343_v31 }
 0x427   :  { %573 = shalt.err (!%p570_p8)
}
 0x428   :  { %s574_s30 = scalar_lea.hbm %s858_s7, 32 }
 0x429   :  { %p575_p9 = scmp.ne.s32.totalorder %s858_s7, %s574_s30  ;;  %p578_p10 = scmp.lt.u32.totalorder %s574_s30, %s858_s7 }
 0x42b   :  { %p580_p11 = pnand %p578_p10, %p575_p9 }
 0x42d   :  { %583 = shalt.err (!%p580_p11)
}
 0x42e   :  { %395 = dma.vmem_to_hbm [thread:$0]  %s393_s12, 32, %s858_s7, [#allocation12]   ;;  %v352_v11 = vadd.f32 %v351_v36, %v350_v32  ;;  %375 = vst.msk [vmem:[#allocation13] sm:$0x3] %vm253_vm3, %v374_v29  ;;  %v346_v37 = vrot.slane %v345_v34, 2 }
 0x42f   :  { %s584_s23 = scalar_lea.vmem %s806_s14, 32  ;;  %p589_p13 = scmp.lt.s32.totalorder %s806_s14, %s806_s14 }
 0x430   :  { %p585_p12 = scmp.ne.s32.totalorder %s806_s14, %s584_s23  ;;  %p590_p0 = scmp.lt.s32.totalorder %s584_s23, %s584_s23 }
 0x432   :  { %p591_p1 = por %p590_p0, %p589_p13 }
 0x434   :  { %p592_p2 = pnand %p591_p1, %p585_p12 }
 0x436   :  { %595 = shalt.err (!%p592_p2)
}
 0x437   :  { %s596_s26 = scalar_lea.hbm %s859_s8, 32 }
 0x438   :  { %p597_p3 = scmp.ne.s32.totalorder %s859_s8, %s596_s26  ;;  %p600_p4 = scmp.lt.u32.totalorder %s596_s26, %s859_s8 }
 0x43a   :  { %p602_p5 = pnand %p600_p4, %p597_p3 }
 0x43c   :  { %605 = shalt.err (!%p602_p5)
}
 0x43d   :  { %405 = dma.vmem_to_hbm [thread:$0]  %s806_s14, 32, %s859_s8, [#allocation12]   ;;  %v353_v38 = vrot.slane %v352_v11, 2  ;;  %v347_v39 = vadd.f32 %v346_v37, %v345_v34  ;;  %vm361_vm5 = vcmask 254976  }
 0x43e   :  { %s651_s29 = smov [#allocation10]  }
 0x43f   :  { %v354_v40 = vadd.f32 %v353_v38, %v352_v11  ;;  %v348_v41 = vrot.slane %v347_v39, 1  ;;  %s382_s9 = sshll.u32 %s651_s29, 4  ;;  %s383_s9 = int_to_ptr.vmem [resolvable:$true] %s382_s9 }
 0x440   :  { %s606_s0 = scalar_lea.vmem %s383_s9, 32  ;;  %p611_p7 = scmp.lt.s32.totalorder %s383_s9, %s383_s9 }
 0x441   :  { %v355_v42 = vrot.slane %v354_v40, 1  ;;  %v349_v43 = vadd.f32 %v348_v41, %v347_v39  ;;  %p607_p6 = scmp.ne.s32.totalorder %s383_s9, %s606_s0  ;;  %p612_p8 = scmp.lt.s32.totalorder %s606_s0, %s606_s0 }
 0x443   :  { %v356_v44 = vadd.f32 %v355_v42, %v354_v40  ;;  %p613_p9 = por %p612_p8, %p611_p7 }
 0x445   :  { %v359_v45 = vsel %vm250_vm2, %v356_v44, %v349_v43  ;;  %p614_p10 = pnand %p613_p9, %p607_p6 }
 0x446   :  { %362 = vst.msk [vmem:[#allocation10] sm:$0x3] %vm361_vm5, %v359_v45 }
 0x447   :  { %617 = shalt.err (!%p614_p10)
}
 0x448   :  { %s618_s11 = scalar_lea.hbm %s857_s6, 32 }
 0x449   :  { %p619_p11 = scmp.ne.s32.totalorder %s857_s6, %s618_s11  ;;  %p622_p12 = scmp.lt.u32.totalorder %s618_s11, %s857_s6 }
 0x44b   :  { %p624_p13 = pnand %p622_p12, %p619_p11 }
 0x44d   :  { %627 = shalt.err (!%p624_p13)
}
 0x44e   :  { %385 = dma.vmem_to_hbm [thread:$0]  %s383_s9, 32, %s857_s6, [#allocation4]  }
 0x44f   :  { %634 = dma.done.wait [#allocation4], 32  }
 0x450   :  { %635 = vsyncadd [#allocation4], 4294967264 }
 0x451   :  { %636 = dma.done.wait [#allocation12], 64  }
 0x452   :  { %637 = vsyncadd [#allocation12], 4294967232 }
 0x453   :  { %415 = vsyncpa [#allocation3], 1 }
 0x454   :  { %416 = vsyncpa [#allocation6], 1 }
 0x455   :  { %417 = vsyncpa [#allocation9], 1 }
 0x456   :  { %418 = vsyncpa [#allocation4], 1 }
 0x457   :  { %419 = vsyncpa [#allocation12], 1 }

</bundles_post_ra>
